<compile_context>
chip_gen: v7x
topology: tpu7x:2x2x1
jax: 0.10.0
libtpu: 0.0.40
codegen_flags: <defaults>
</compile_context>

<pallas_src>
import functools

import numpy as np
import jax
import jax.numpy as jnp
from jax.experimental import pallas as pl
from jax.experimental.pallas import tpu as pltpu

EPS = 100.0

# Packed weight-slab layout (feature-major [out, in] blocks, 8-row aligned):
#   rows  0:12 : W1 = block_diag(fcs1_w [8,SD], fca1_w [4,AD]) -> h1 = [s1; a1]
#   rows 16:24 : Wm = [[fcs2_w, 0], [0, I4]]                   -> h2 = [s2; a1]
#   rows 24:28 : W2 = fc2_w [4, 8]                             -> x
_W_ROWS = 32
# Packed bias/vector slab (always float32):
#   col 0 rows 0:12 : [fcs1_b; fca1_b]
#   col 1 rows 0:8  : [fcs2_b; 0]
#   col 2 rows 0:4  : fc2_b
#   col 3 rows 0:4  : fc3_w (as a column), row 4: fc3_b
_V_SHAPE = (16, 8)


# ----------------------------------------------------------------------------
# Kernel: one batch tile per grid step, whole MLP fused, feature-major layout.
# ----------------------------------------------------------------------------
def _critic_kernel(s_ref, a_ref, w_ref, v_ref, out_ref, *, state_dim, action_dim):
    sd, ad = state_dim, action_dim
    f32 = jnp.float32
    cdt = w_ref.dtype                       # matmul operand dtype (f32 or bf16)

    # Transposed layout: [features, batch_tile] -> batch on lanes (lane-dense).
    xT = jnp.concatenate([s_ref[...].T, a_ref[...].T], axis=0)      # [sd+ad, TM]

    w1 = w_ref[0:12, 0:sd + ad]             # block_diag(fcs1_w, fca1_w)
    wm = w_ref[16:24, 0:12]                 # [[fcs2_w, 0], [0, I4]]
    w2 = w_ref[24:28, 0:8]                  # fc2_w
    b1 = v_ref[0:12, 0:1]                   # [fcs1_b; fca1_b]
    bm = v_ref[0:8, 1:2]                    # [fcs2_b; 0]
    b2 = v_ref[0:4, 2:3]                    # fc2_b
    w3 = v_ref[0:4, 3:4]                    # fc3_w as a column
    b3 = v_ref[4:5, 3:4]                    # fc3_b

    # h1 = [relu(fcs1(state)); relu(fca1(action))]                   [12, TM]
    h1 = jnp.maximum(jnp.dot(w1, xT, preferred_element_type=f32) + b1, 0.0)
    # h2 = [relu(fcs2(s1)); a1]   (identity rows emulate torch.cat;
    #      relu is a no-op on the already non-negative a1)            [8, TM]
    h2 = jnp.maximum(
        jnp.dot(wm, h1.astype(cdt), preferred_element_type=f32) + bm, 0.0)
    # x = relu(fc2([s2; a1]))                                         [4, TM]
    x = jnp.maximum(
        jnp.dot(w2, h2.astype(cdt), preferred_element_type=f32) + b2, 0.0)
    # q = fc3(x): 4->1 on the VPU/XLU, result is a lane-dense [1, TM] row.
    q = jnp.sum(x * w3, axis=0, keepdims=True) + b3
    out_ref[...] = q.astype(out_ref.dtype)


# ----------------------------------------------------------------------------
# One-time parameter packing (outside the per-call path).
# ----------------------------------------------------------------------------
def prepare_critic_params(params, compute_dtype=jnp.float32):
    fcs1_w = jnp.asarray(params["fcs1_w"], jnp.float32)    # [8, SD]
    fca1_w = jnp.asarray(params["fca1_w"], jnp.float32)    # [4, AD]
    fcs2_w = jnp.asarray(params["fcs2_w"], jnp.float32)    # [4, 8]
    fc2_w = jnp.asarray(params["fc2_w"], jnp.float32)      # [4, 8]
    fc3_w = jnp.asarray(params["fc3_w"], jnp.float32)      # [1, 4]
    sd, ad = fcs1_w.shape[1], fca1_w.shape[1]
    cols = max(sd + ad, 12)

    w = jnp.zeros((_W_ROWS, cols), jnp.float32)
    w = w.at[0:8, 0:sd].set(fcs1_w)
    w = w.at[8:12, sd:sd + ad].set(fca1_w)
    w = w.at[16:20, 0:8].set(fcs2_w)
    w = w.at[20:24, 8:12].set(jnp.eye(4, dtype=jnp.float32))
    w = w.at[24:28, 0:8].set(fc2_w)

    v = jnp.zeros(_V_SHAPE, jnp.float32)
    v = v.at[0:8, 0].set(jnp.asarray(params["fcs1_b"], jnp.float32))
    v = v.at[8:12, 0].set(jnp.asarray(params["fca1_b"], jnp.float32))
    v = v.at[0:4, 1].set(jnp.asarray(params["fcs2_b"], jnp.float32))
    v = v.at[0:4, 2].set(jnp.asarray(params["fc2_b"], jnp.float32))
    v = v.at[0:4, 3].set(fc3_w.reshape(4))
    v = v.at[4, 3].set(jnp.asarray(params["fc3_b"], jnp.float32)[0])

    return {"w": w.astype(compute_dtype), "v": v}


def _round_up(x, m):
    return (x + m - 1) // m * m


# ----------------------------------------------------------------------------
# Wrapper: batch tiling + pallas_call.
# ----------------------------------------------------------------------------
@functools.partial(jax.jit, static_argnames=("block_rows", "vmem_limit_bytes"))
def critic_forward(state, action, prepared, *, block_rows=1024,
                   vmem_limit_bytes=32 * 1024 * 1024):
    """Q(s, a): state [n, SD], action [n, AD] -> [n, 1] float32."""
    assert block_rows % 128 == 0, "block_rows must be a multiple of 128"
    w, v = prepared["w"], prepared["v"]
    n, sd = state.shape
    ad = action.shape[1]

    # Tile the batch: single block if it fits, otherwise block_rows-row tiles.
    # block_rows=1024 keeps double-buffered f32 blocks ~2-3 MiB (safe for
    # v7x's 64 MiB VMEM); it can be raised on v5e/v6e (128 MiB).
    n8 = _round_up(n, 8)
    tm = n8 if n8 <= block_rows else block_rows
    n_pad = _round_up(n, tm)

    cdt = w.dtype
    s = state.astype(cdt)
    a = action.astype(cdt)
    if n_pad != n:
        s = jnp.pad(s, ((0, n_pad - n), (0, 0)))
        a = jnp.pad(a, ((0, n_pad - n), (0, 0)))

    kernel = functools.partial(_critic_kernel, state_dim=sd, action_dim=ad)

    q_rows = pl.pallas_call(
        kernel,
        out_shape=jax.ShapeDtypeStruct((1, n_pad), jnp.float32),
        grid=(n_pad // tm,),
        in_specs=[
            pl.BlockSpec((tm, sd), lambda i: (i, 0)),       # state tile
            pl.BlockSpec((tm, ad), lambda i: (i, 0)),       # action tile
            pl.BlockSpec(w.shape, lambda i: (0, 0)),        # resident weights
            pl.BlockSpec(v.shape, lambda i: (0, 0)),        # resident biases
        ],
        out_specs=pl.BlockSpec((1, tm), lambda i: (0, i)),  # lane-dense Q row
        compiler_params=pltpu.CompilerParams(
            dimension_semantics=("parallel",),
            vmem_limit_bytes=vmem_limit_bytes,
        ),
    )(s, a, w, v)

    return q_rows[0, :n][:, None]


# ----------------------------------------------------------------------------
# Deterministic parameter init mirroring the torch module.
# ----------------------------------------------------------------------------
def fanin_init(key, size, fanin=None):
    fanin = fanin or size[0]               # replicate the original quirk
    bound = 1.0 / np.sqrt(float(fanin))
    return jax.random.uniform(key, size, jnp.float32, -bound, bound)


def init_critic_params(key, state_dim, action_dim):
    ks = jax.random.split(key, 10)

    def default_bias(k, out_f, in_f):
        bound = 1.0 / np.sqrt(float(in_f))
        return jax.random.uniform(k, (out_f,), jnp.float32, -bound, bound)

    return {
        "fcs1_w": fanin_init(ks[0], (8, state_dim)),
        "fcs1_b": default_bias(ks[1], 8, state_dim),
        "fcs2_w": fanin_init(ks[2], (4, 8)),
        "fcs2_b": default_bias(ks[3], 4, 8),
        "fca1_w": fanin_init(ks[4], (4, action_dim)),
        "fca1_b": default_bias(ks[5], 4, action_dim),
        "fc2_w": fanin_init(ks[6], (4, 8)),
        "fc2_b": default_bias(ks[7], 4, 8),
        "fc3_w": jax.random.uniform(ks[8], (1, 4), jnp.float32, -EPS, EPS),
        "fc3_b": default_bias(ks[9], 1, 4),
    }


# Ground-truth reference in float64 (numpy, no MXU rounding).
def critic_ref_np(state, action, p):
    s = np.asarray(state, np.float64)
    a = np.asarray(action, np.float64)
    W = {k: np.asarray(val, np.float64) for k, val in p.items()}
    s1 = np.maximum(s @ W["fcs1_w"].T + W["fcs1_b"], 0.0)
    s2 = np.maximum(s1 @ W["fcs2_w"].T + W["fcs2_b"], 0.0)
    a1 = np.maximum(a @ W["fca1_w"].T + W["fca1_b"], 0.0)
    x = np.concatenate([s2, a1], axis=1)
    x = np.maximum(x @ W["fc2_w"].T + W["fc2_b"], 0.0)
    return x @ W["fc3_w"].T + W["fc3_b"]


if __name__ == "__main__":
    state_dim, action_dim, n = 16, 8, 8

    key = jax.random.PRNGKey(0)
    k_params, k_state, k_action, k_state2, k_action2 = jax.random.split(key, 5)

    params = init_critic_params(k_params, state_dim, action_dim)
    state = jax.random.normal(k_state, (n, state_dim), jnp.float32)
    action = jax.random.normal(k_action, (n, action_dim), jnp.float32)

    # Snap test values to bf16-representable floats so the check is independent
    # of how the MXU decomposes f32 operands; ground truth is numpy float64.
    snap = lambda t: jax.tree_util.tree_map(
        lambda x: x.astype(jnp.bfloat16).astype(jnp.float32), t)
    params = snap(params)
    state, action = snap(state), snap(action)

    prepared = prepare_critic_params(params)

    # Case 1: small single-block batch.
    q = critic_forward(state, action, prepared)
    jax.block_until_ready(q)
    q_ref = critic_ref_np(state, action, params)
    assert q.shape == (n, 1)
    scale = max(1.0, float(np.max(np.abs(q_ref))))
    err = float(np.max(np.abs(np.asarray(q, np.float64) - q_ref)))
    # Tolerance budgets worst-case bf16 rounding of intermediate activations on
    # the MXU (fc3 weights are O(EPS)=O(100), so absolute errors scale with q).
    assert err <= 1e-2 * scale, (err, scale)

    # Case 2: multi-block grid (exercises tiling, padding, parallel batch axis).
    n2 = 300
    state2 = snap(jax.random.normal(k_state2, (n2, state_dim), jnp.float32))
    action2 = snap(jax.random.normal(k_action2, (n2, action_dim), jnp.float32))
    q2 = critic_forward(state2, action2, prepared, block_rows=128)
    jax.block_until_ready(q2)
    q2_ref = critic_ref_np(state2, action2, params)
    assert q2.shape == (n2, 1)
    scale2 = max(1.0, float(np.max(np.abs(q2_ref))))
    err2 = float(np.max(np.abs(np.asarray(q2, np.float64) - q2_ref)))
    assert err2 <= 1e-2 * scale2, (err2, scale2)

    print("KERNEL_OK")
</pallas_src>

<mosaic_0001>
module attributes {stable_mosaic.version = 11 : i64} {
  func.func @_critic_kernel(%arg0: i32, %arg1: memref<8x16xf32, #tpu.memory_space<vmem>>, %arg2: memref<8x8xf32, #tpu.memory_space<vmem>>, %arg3: memref<32x24xf32, #tpu.memory_space<vmem>>, %arg4: memref<16x8xf32, #tpu.memory_space<vmem>>, %arg5: memref<1x8xf32, #tpu.memory_space<vmem>>) attributes {dimension_semantics = [#tpu.dimension_semantics<parallel>], iteration_bounds = array<i64: 1>, scalar_prefetch = 0 : i64, scratch_operands = 0 : i64, tpu.core_type = #tpu.core_type<tc>, window_params = [{transform_indices = @transform_0, window_bounds = array<i64: 8, 16>}, {transform_indices = @transform_1, window_bounds = array<i64: 8, 8>}, {pipeline_mode = #tpu.pipeline_mode<synchronous>, transform_indices = @transform_2, window_bounds = array<i64: 32, 24>}, {pipeline_mode = #tpu.pipeline_mode<synchronous>, transform_indices = @transform_3, window_bounds = array<i64: 16, 8>}, {transform_indices = @transform_4, window_bounds = array<i64: 1, 8>}]} {
    %c0 = arith.constant 0 : index
    %c0_0 = arith.constant 0 : index
    %0 = vector.load %arg1[%c0, %c0_0] : memref<8x16xf32, #tpu.memory_space<vmem>>, vector<8x16xf32>
    %1 = tpu.transpose %0, [1, 0] : vector<8x16xf32> -> vector<16x8xf32>
    %c0_1 = arith.constant 0 : index
    %c0_2 = arith.constant 0 : index
    %2 = vector.load %arg2[%c0_1, %c0_2] : memref<8x8xf32, #tpu.memory_space<vmem>>, vector<8x8xf32>
    %3 = tpu.transpose %2, [1, 0] : vector<8x8xf32> -> vector<8x8xf32>
    %4 = tpu.concatenate %1, %3 in 0 : vector<16x8xf32>, vector<8x8xf32> -> vector<24x8xf32>
    %c0_3 = arith.constant 0 : index
    %c0_4 = arith.constant 0 : index
    %5 = vector.load %arg3[%c0_3, %c0_4] : memref<32x24xf32, #tpu.memory_space<vmem>>, vector<12x24xf32>
    %c16 = arith.constant 16 : index
    %c0_5 = arith.constant 0 : index
    %6 = vector.load %arg3[%c16, %c0_5] : memref<32x24xf32, #tpu.memory_space<vmem>>, vector<8x12xf32>
    %c24 = arith.constant 24 : index
    %c0_6 = arith.constant 0 : index
    %7 = vector.load %arg3[%c24, %c0_6] : memref<32x24xf32, #tpu.memory_space<vmem>>, vector<4x8xf32>
    %c0_7 = arith.constant 0 : index
    %c0_8 = arith.constant 0 : index
    %8 = vector.load %arg4[%c0_7, %c0_8] : memref<16x8xf32, #tpu.memory_space<vmem>>, vector<12x1xf32>
    %c0_9 = arith.constant 0 : index
    %c1 = arith.constant 1 : index
    %9 = vector.load %arg4[%c0_9, %c1] : memref<16x8xf32, #tpu.memory_space<vmem>>, vector<8x1xf32>
    %c0_10 = arith.constant 0 : index
    %c2 = arith.constant 2 : index
    %10 = vector.load %arg4[%c0_10, %c2] : memref<16x8xf32, #tpu.memory_space<vmem>>, vector<4x1xf32>
    %c0_11 = arith.constant 0 : index
    %c3 = arith.constant 3 : index
    %11 = vector.load %arg4[%c0_11, %c3] : memref<16x8xf32, #tpu.memory_space<vmem>>, vector<4x1xf32>
    %c4 = arith.constant 4 : index
    %c3_12 = arith.constant 3 : index
    %12 = vector.load %arg4[%c4, %c3_12] : memref<16x8xf32, #tpu.memory_space<vmem>>, vector<1x1xf32>
    %cst = arith.constant dense<0.000000e+00> : vector<12x8xf32>
    %13 = tpu.matmul %5, %4, %cst {dimension_numbers = #tpu.dot_dimension_numbers<[1], [0], [0], [1], [0, 0, 1, 1], [], []>} : vector<12x24xf32>, vector<24x8xf32>, vector<12x8xf32> -> vector<12x8xf32>
    %14 = vector.broadcast %8 : vector<12x1xf32> to vector<12x8xf32>
    %15 = arith.addf %13, %14 : vector<12x8xf32>
    %cst_13 = arith.constant 0.000000e+00 : f32
    %16 = vector.broadcast %cst_13 : f32 to vector<12x8xf32>
    %17 = arith.maximumf %15, %16 : vector<12x8xf32>
    %cst_14 = arith.constant dense<0.000000e+00> : vector<8x8xf32>
    %18 = tpu.matmul %6, %17, %cst_14 {dimension_numbers = #tpu.dot_dimension_numbers<[1], [0], [0], [1], [0, 0, 1, 1], [], []>} : vector<8x12xf32>, vector<12x8xf32>, vector<8x8xf32> -> vector<8x8xf32>
    %19 = vector.broadcast %9 : vector<8x1xf32> to vector<8x8xf32>
    %20 = arith.addf %18, %19 : vector<8x8xf32>
    %cst_15 = arith.constant 0.000000e+00 : f32
    %21 = vector.broadcast %cst_15 : f32 to vector<8x8xf32>
    %22 = arith.maximumf %20, %21 : vector<8x8xf32>
    %cst_16 = arith.constant dense<0.000000e+00> : vector<4x8xf32>
    %23 = tpu.matmul %7, %22, %cst_16 {dimension_numbers = #tpu.dot_dimension_numbers<[1], [0], [0], [1], [0, 0, 1, 1], [], []>} : vector<4x8xf32>, vector<8x8xf32>, vector<4x8xf32> -> vector<4x8xf32>
    %24 = vector.broadcast %10 : vector<4x1xf32> to vector<4x8xf32>
    %25 = arith.addf %23, %24 : vector<4x8xf32>
    %cst_17 = arith.constant 0.000000e+00 : f32
    %26 = vector.broadcast %cst_17 : f32 to vector<4x8xf32>
    %27 = arith.maximumf %25, %26 : vector<4x8xf32>
    %28 = vector.broadcast %11 : vector<4x1xf32> to vector<4x8xf32>
    %29 = arith.mulf %27, %28 : vector<4x8xf32>
    %cst_18 = arith.constant dense<0.000000e+00> : vector<8xf32>
    %30 = vector.multi_reduction <add>, %29, %cst_18 [0] : vector<4x8xf32> to vector<8xf32>
    %31 = vector.shape_cast %30 : vector<8xf32> to vector<1x8xf32>
    %32 = vector.broadcast %12 : vector<1x1xf32> to vector<1x8xf32>
    %33 = arith.addf %31, %32 : vector<1x8xf32>
    %c0_19 = arith.constant 0 : index
    %c0_20 = arith.constant 0 : index
    %34 = vector.load %arg5[%c0_19, %c0_20] : memref<1x8xf32, #tpu.memory_space<vmem>>, vector<1x8xf32>
    tpu.vector_store %arg5[%c0_19, %c0_20], %33 {strides = array<i32>} : memref<1x8xf32, #tpu.memory_space<vmem>>, vector<1x8xf32>,
    return
  }
  func.func @transform_0(%arg0: i32) -> (i32, i32) {
    %c0_i32 = arith.constant 0 : i32
    %c0_i32_0 = arith.constant 0 : i32
    return %arg0, %c0_i32 : i32, i32
  }
  func.func @transform_1(%arg0: i32) -> (i32, i32) {
    %c0_i32 = arith.constant 0 : i32
    %c0_i32_0 = arith.constant 0 : i32
    return %arg0, %c0_i32 : i32, i32
  }
  func.func @transform_2(%arg0: i32) -> (i32, i32) {
    %c0_i32 = arith.constant 0 : i32
    %c0_i32_0 = arith.constant 0 : i32
    %c0_i32_1 = arith.constant 0 : i32
    return %c0_i32, %c0_i32_0 : i32, i32
  }
  func.func @transform_3(%arg0: i32) -> (i32, i32) {
    %c0_i32 = arith.constant 0 : i32
    %c0_i32_0 = arith.constant 0 : i32
    %c0_i32_1 = arith.constant 0 : i32
    return %c0_i32, %c0_i32_0 : i32, i32
  }
  func.func @transform_4(%arg0: i32) -> (i32, i32) {
    %c0_i32 = arith.constant 0 : i32
    %c0_i32_0 = arith.constant 0 : i32
    return %c0_i32, %arg0 : i32, i32
  }
}

</mosaic_0001>

<bundles_post_ra>
// kernel: critic_forward.1
= control target key start
LH: loop header
LB: loop body
LE: loop exit
PB: predicated region body
PF: predicated region fallthrough
CT: control target
= control target key end

     0   :  { %s546_s0 = inlined_call_operand.vmem [shape: f32[8,16], index: 0, kind: input, shape index: {}]   ;;  %s547_s1 = inlined_call_operand.vmem [shape: f32[8,8], index: 1, kind: input, shape index: {}]   ;;  %s548_s2 = inlined_call_operand.vmem [shape: f32[32,24], index: 2, kind: input, shape index: {}]   ;;  %s549_s3 = inlined_call_operand.vmem [shape: f32[16,8], index: 3, kind: input, shape index: {}]   ;;  %s550_s4 = inlined_call_operand.hbm [shape: f32[1,8], index: 4, kind: output, shape index: {}]  }
   0x1   :  { %v18_v0 = vld [vmem:[%s546_s0] sm:$0xff] }
   0x2   :  { %9 = vsyncpa [#allocation3], 0  ;;  %19 = vxpose.xlu0.b32.start.end [1/1] (short) (narrow) %v18_v0, 16  ;;  %v51_v1 = vld [vmem:[%s547_s1] sm:$0xff]  ;;  %vm102_vm0 = vcmask 195584   ;;  %v466_v4 = vmov 0  }
   0x3   :  { %v84_v2 = vld [vmem:[%s548_s2] sm:$0xff]  ;;  %437 = vset.pattern.permute.xlu1 %v466_v4  ;;  %v89_v5 = vld [vmem:[%s549_s3 + $0x8] sm:$0xf]  ;;  %v467_v11 = vmov 0.0|0.0   ;;  %vm468_vm1 = vmmov 0   ;;  %v469_v12 = vmov 0.0  }
   0x4   :  { %405 = vmatprep.mubr.msk.f32.mxu0 %vm102_vm0, %v84_v2  ;;  %v88_v3 = vld [vmem:[%s549_s3] sm:$0xff]  ;;  %v85_v10 = vld [vmem:[%s548_s2 + $0x8] sm:$0xf]  ;;  %424 = vmatprep.subr.bf16.mxu1 %v467_v11  ;;  %v470_v13 = vmov 1   ;;  %vm194_vm2 = vcmask 1043456   ;;  %vm471_vm3 = vmmov 1  }
   0x5   :  { %94 = vperm.xlu1 %437, %v88_v3   ;;  %412 = vmatprep.mubr.msk.f32.mxu1 %vm468_vm1, %v469_v12  ;;  %vm426_vm4 = vmpackc.low %vm194_vm2, %vm471_vm3  ;;  %v86_v23 = vld [vmem:[%s548_s2 + $0x10] sm:$0xff]  ;;  %vm190_vm5 = vcmask 97280   ;;  %v90_v24 = vld [vmem:[%s549_s3] sm:$0xf]  ;;  %v472_v25 = vmov 2   ;;  %v473_v26 = vmov 3  }
   0x6   :  { %v91_v27 = vld [vmem:[%s549_s3 + $0x4] sm:$0x1]  ;;  %v87_v33 = vld [vmem:[%s548_s2 + $0x18] sm:$0xf]  ;;  %vm274_vm6 = vcmask 64512   ;;  %vm354_vm7 = vcmask 60416  }
   0x7   :  { %52 = vxpose.xlu0.b32.start.end [1/1] (short) (narrow) %v51_v1, 8  ;;  %s474_s3 = smov [#allocation2]   ;;  %vm368_vm8 = vcmask 57344  }
   0x8   :  { %s376_s7 = sshll.u32 %s474_s3, 4  ;;  %s377_s7 = int_to_ptr.vmem [resolvable:$true] %s376_s7 }
   0x9   :  { %99 = vperm.xlu1 %437, %v89_v5   ;;  %s442_s2 = scalar_lea.vmem %s377_s7, 16  ;;  %s446_s8 = scalar_lea.vmem %s377_s7, 32 }
   0xa   :  { %p443_p0 = scmp.ne.s32.totalorder %s377_s7, %s442_s2  ;;  %p447_p1 = scmp.lt.s32.totalorder %s377_s7, %s377_s7 }
   0xb   :  { %p448_p2 = scmp.lt.s32.totalorder %s446_s8, %s442_s2 }
   0xd   :  { %438 = vset.pattern.permute.xlu1 %v470_v13  ;;  %p449_p3 = por %p448_p2, %p447_p1 }
   0xe   :  { %187 = vperm.xlu1 %438, %v88_v3  }
   0xf   :  { %p450_p4 = pnand %p449_p3, %p443_p0 }
  0x12   :  { %440 = vset.pattern.permute.xlu1 %v473_v26 }
  0x13   :  { %350 = vperm.xlu1 %440, %v90_v24  }
  0x17   :  { %364 = vperm.xlu1 %440, %v91_v27  }
  0x30   :  { %439 = vset.pattern.permute.xlu0 %v472_v25 }
  0x31   :  { %271 = vperm.xlu0 %439, %v90_v24  }
  0x35   :  { %441 = vset.pattern.permute.xlu0 %v473_v26 }
  0x82   :  { %v35_v6 = vpop.trf.xlu0 }
  0x84   :  { %v95_v14 = vpop.permute.xlu1 %94 }
  0x86   :  { %v36_v7 = vpop.trf.xlu0 }
  0x87   :  { %v420_v8 = vpack.c.bf16 %v36_v7, %v35_v6 }
  0x88   :  { %v100_v15 = vpop.permute.xlu1 %99 }
  0x89   :  { %421 = vmatprep.subr.bf16.mxu0 %v420_v8 }
  0x8a   :  { %423 = vmatpush3.bf16.msra.mxu0 %v420_v8  ;;  %v68_v9 = vpop.trf.xlu0 }
  0x8b   :  { %403 = vmatprep.subr.mxu0 %v68_v9 }
  0x8d   :  { %v188_v28 = vpop.permute.xlu1 %187 }
  0x8e   :  { %404 = vmatpush3.msra.mxu0 %v68_v9 }
  0x8f   :  { %406 = vmatmul.mubr.msk.f32.vlgmr.msra.gmra.mrb[0].mxu0 %vm102_vm0, %v85_v10 }
  0x92   :  { %v351_v39 = vpop.permute.xlu1 %350 }
  0x96   :  { %v365_v48 = vpop.permute.xlu1 %364 }
  0xb0   :  { %v272_v34 = vpop.permute.xlu0 %271 }
 0x162   :  { %v407_v16 = vpop.f32.mrb[0].mxu0 }
 0x163   :  { %v181_v17 = vadd.f32 %v407_v16, %v100_v15  ;;  %v175_v18 = vpop.f32.mrb[1].mxu0 }
 0x164   :  { %v176_v19 = vadd.f32 %v175_v18, %v95_v14 }
 0x165   :  { %v185_v20 = vmax.f32 %v181_v17, 0.0 }
 0x166   :  { %v184_v21 = vmax.f32 %v176_v19, 0.0 }
 0x168   :  { %v425_v22 = vpack.c.bf16 %v185_v20, %v184_v21 }
 0x16a   :  { %427 = vmatpush3.bf16.msk.msra.mxu1 %vm426_vm4, %v425_v22 }
 0x16b   :  { %415 = vmatprep.subr.mxu1 %v469_v12 }
 0x16d   :  { %413 = vmatmul.mubr.msk.f32.vlgmr.msra.gmra.mrb[0].mxu1 %vm190_vm5, %v86_v23 }
 0x16e   :  { %417 = vmatprep.mubr.msk.f32.mxu1 %vm468_vm1, %v469_v12 }
 0x240   :  { %v264_v29 = vpop.f32.mrb[0].mxu1 }
 0x241   :  { %v265_v30 = vadd.f32 %v264_v29, %v188_v28  ;;  %v414_v31 = vpop.f32.mrb[1].mxu1 }
 0x243   :  { %v268_v32 = vmax.f32 %v265_v30, 0.0 }
 0x245   :  { %416 = vmatpush3.msra.mxu1 %v268_v32 }
 0x246   :  { %418 = vmatmul.mubr.msk.f32.vlgmr.msra.gmra.mrb[2].mxu1 %vm274_vm6, %v87_v33 }
 0x319   :  { %v344_v35 = vpop.f32.mrb[2].mxu1 }
 0x31a   :  { %v345_v36 = vadd.f32 %v344_v35, %v272_v34  ;;  %v419_v37 = vpop.f32.mrb[3].mxu1 }
 0x31c   :  { %v348_v38 = vmax.f32 %v345_v36, 0.0 }
 0x31e   :  { %v353_v40 = vmul.f32 %v351_v39, %v348_v38 }
 0x320   :  { %v355_v41 = vsel %vm354_vm7, %v353_v40, 0.0 }
 0x321   :  { %v356_v42 = vrot.slane %v355_v41, 4 }
 0x323   :  { %v357_v43 = vadd.f32 %v356_v42, %v355_v41 }
 0x325   :  { %v358_v44 = vrot.slane %v357_v43, 2 }
 0x327   :  { %v359_v45 = vadd.f32 %v358_v44, %v357_v43 }
 0x329   :  { %v360_v46 = vrot.slane %v359_v45, 1 }
 0x32b   :  { %v361_v47 = vadd.f32 %v360_v46, %v359_v45 }
 0x32d   :  { %v367_v49 = vadd.f32 %v365_v48, %v361_v47 }
 0x32f   :  { %369 = vst.msk [vmem:[#allocation2] sm:$0x1] %vm368_vm8, %v367_v49 }
 0x330   :  { %453 = shalt.err (!%p450_p4)
}
 0x331   :  { %s454_s11 = scalar_lea.hbm %s550_s4, 16 }
 0x332   :  { %p455_p5 = scmp.ne.s32.totalorder %s550_s4, %s454_s11  ;;  %p458_p6 = scmp.lt.u32.totalorder %s454_s11, %s550_s4 }
 0x334   :  { %p460_p7 = pnand %p458_p6, %p455_p5 }
 0x336   :  { %463 = shalt.err (!%p460_p7)
}
 0x337   :  { %379 = dma.vmem_to_hbm [thread:$0]  %s377_s7, 16, %s550_s4, [#allocation3]  }
 0x338   :  { %464 = dma.done.wait [#allocation3], 16  }
 0x339   :  { %465 = vsyncadd [#allocation3], 4294967280 }
 0x33a   :  { %383 = vsyncpa [#allocation3], 1 }

</bundles_post_ra>
